<compile_context>
chip_gen: v7x
topology: tpu7x:2x2x1
jax: 0.10.0
libtpu: 0.0.40
codegen_flags: <defaults>
</compile_context>

<pallas_src>
import jax
import jax.numpy as jnp
from jax import lax
from jax.experimental import pallas as pl
from jax.experimental.pallas import tpu as pltpu
import numpy as np

_TB_MAX = 1024        # feature tile rows: 2 MB f32 (1 MB bf16) per buffer -> fits v5e/v6e/v7x defaults
_SMALL_BATCH = 1024   # below this, dispatch to fused XLA (pallas launch overhead dominates)


def _cosine_kernel(scale_ref, x_ref, w_ref, inv_w_ref, o_ref):
    # scale_ref : SMEM (1,)  f32      -- scale_cls
    # x_ref     : VMEM (tb, C) native -- batch tile of features (bf16 or f32)
    # w_ref     : VMEM (Kp, C) native -- weight, native (num_classes, num_channels) layout, lane-padded rows
    # inv_w_ref : VMEM (1, Kp) f32    -- precomputed 1/max(||w_k||, 1e-12)  (0 on padded classes)
    # o_ref     : VMEM (tb, Kp) f32   -- scores tile
    x = x_ref[...]
    x32 = x.astype(jnp.float32)

    # Row sum-of-squares (lane reduction) + EUP rsqrt; fold the x-side normalization into the
    # post-matmul rescale so the MXU sees raw inputs (no pre-matmul VPU pass, shorter dependency).
    # NOTE: for astronomically large |x| the raw dot can overflow where F.normalize would not;
    # acceptable edge case for classifier features.
    ssx = jnp.sum(x32 * x32, axis=1, keepdims=True)           # (tb, 1)
    inv_x = lax.rsqrt(jnp.maximum(ssx, 1e-24))                # (tb, 1)

    # (tb, C) x (Kp, C) contracted over C -> (tb, Kp); f32 accumulation on the MXU.
    s = lax.dot_general(
        x, w_ref[...],
        dimension_numbers=(((1,), (1,)), ((), ())),
        preferred_element_type=jnp.float32,
    )

    # Outer-product rescale: row scale (inv_x * scale_cls), column scale inv_w. Padded classes
    # have inv_w == 0 (and zero weight rows), so they stay exactly 0 and are sliced off outside.
    o_ref[...] = (s * (inv_x * scale_ref[0]) * inv_w_ref[...]).astype(o_ref.dtype)


def _reference_forward(features, weight, scale_cls):
    # Pure-JAX reference matching the PyTorch semantics exactly (also the small-batch fast path).
    x = features.astype(jnp.float32)
    w = jnp.transpose(weight).astype(jnp.float32)             # (C, K) == weight.t()
    x_n = x / jnp.maximum(jnp.linalg.norm(x, axis=1, keepdims=True), 1e-12)
    w_n = w / jnp.maximum(jnp.linalg.norm(w, axis=0, keepdims=True), 1e-12)
    return (x_n @ w_n) * jnp.reshape(scale_cls, (1, 1)).astype(jnp.float32)


def classifier_forward(features, weight, scale_cls, *, use_pallas=None, tb_max=_TB_MAX):
    """features: (B, C) (f32 or bf16); weight: (num_classes, num_channels) (native PyTorch layout);
       scale_cls: () or (1,). Returns (B, num_classes) f32 cosine scores."""
    assert features.ndim == 2 and weight.ndim == 2
    B, C = features.shape
    K, C2 = weight.shape
    assert C == C2

    if use_pallas is None:
        use_pallas = B >= _SMALL_BATCH
    if not use_pallas:
        return _reference_forward(features, weight, scale_cls)

    # Lane-pad the class dim so output stores are dense vst (no-op when K % 128 == 0).
    Kp = pl.cdiv(K, 128) * 128
    w = weight.astype(features.dtype)                          # MXU wants matching operand dtypes
    if Kp != K:
        w = jnp.pad(w, ((0, Kp - K), (0, 0)))

    # Per-class inverse norm hoisted out of the grid loop (one tiny XLA pass over (K, C)).
    # 1/max(||w_k||, 1e-12) == rsqrt(max(sum(w_k^2), 1e-24)).
    w32 = weight.astype(jnp.float32)
    inv_w = lax.rsqrt(jnp.maximum(jnp.sum(w32 * w32, axis=1), 1e-24))   # (K,)
    if Kp != K:
        inv_w = jnp.pad(inv_w, (0, Kp - K))                    # padded classes -> exact 0 score
    inv_w = inv_w.reshape(1, Kp)

    # Batch tiling: full block for small B, else fixed tb (multiple of 8) with a cdiv grid and a
    # Pallas-masked partial last tile.
    if B <= tb_max:
        tb = B
    else:
        tb = max(8, (tb_max // 8) * 8)
    grid = (pl.cdiv(B, tb),)

    scale = jnp.reshape(scale_cls, (1,)).astype(jnp.float32)

    out = pl.pallas_call(
        _cosine_kernel,
        out_shape=jax.ShapeDtypeStruct((B, Kp), jnp.float32),
        grid=grid,
        in_specs=[
            pl.BlockSpec(memory_space=pltpu.SMEM),             # scale_cls (scalar)
            pl.BlockSpec((tb, C), lambda i: (i, 0)),           # features batch tile (native dtype)
            pl.BlockSpec((Kp, C), lambda i: (0, 0)),           # weight, full lane-dense block
            pl.BlockSpec((1, Kp), lambda i: (0, 0)),           # precomputed per-class inv norms
        ],
        out_specs=pl.BlockSpec((tb, Kp), lambda i: (i, 0)),
        compiler_params=pltpu.CompilerParams(
            dimension_semantics=("parallel",),
        ),
    )(scale, features, w, inv_w)

    return out[:, :K] if Kp != K else out


if __name__ == "__main__":
    # Module defaults: num_channels=512, num_classes=4, cosine classifier, scale_cls=10, bias=False.
    num_channels = 512
    num_classes = 4
    batch = 8

    key = jax.random.PRNGKey(0)
    k_x, k_w, k_x2 = jax.random.split(key, 3)

    # weight ~ Normal(0, sqrt(2 / num_channels)), shape (num_classes, num_channels); scale_cls = 10.
    weight = jax.random.normal(k_w, (num_classes, num_channels), dtype=jnp.float32) * np.sqrt(
        2.0 / num_channels
    )
    scale_cls = jnp.array([10.0], dtype=jnp.float32)
    features = jax.random.normal(k_x, (batch, num_channels), dtype=jnp.float32)

    # 1) Pallas kernel at the module's default toy shape (forced, to exercise the kernel).
    scores = classifier_forward(features, weight, scale_cls, use_pallas=True)
    jax.block_until_ready(scores)
    ref = _reference_forward(features, weight, scale_cls)
    np.testing.assert_allclose(np.asarray(scores), np.asarray(ref), rtol=1e-5, atol=1e-5)

    # 2) cdiv / partial-last-tile path: B not a multiple of the tile (small tb_max to keep it tiny).
    features2 = jax.random.normal(k_x2, (20, num_channels), dtype=jnp.float32)
    scores2 = classifier_forward(features2, weight, scale_cls, use_pallas=True, tb_max=8)
    jax.block_until_ready(scores2)
    ref2 = _reference_forward(features2, weight, scale_cls)
    np.testing.assert_allclose(np.asarray(scores2), np.asarray(ref2), rtol=1e-5, atol=1e-5)

    # 3) Auto-dispatch small-batch fast path (pure-XLA) still matches.
    scores3 = classifier_forward(features, weight, scale_cls)
    jax.block_until_ready(scores3)
    np.testing.assert_allclose(np.asarray(scores3), np.asarray(ref), rtol=1e-5, atol=1e-5)

    print("KERNEL_OK")
</pallas_src>

<mosaic_0001>
module attributes {stable_mosaic.version = 11 : i64} {
  func.func @_cosine_kernel(%arg0: i32, %arg1: memref<1xf32, #tpu.memory_space<smem>>, %arg2: memref<8x512xf32, #tpu.memory_space<vmem>>, %arg3: memref<128x512xf32, #tpu.memory_space<vmem>>, %arg4: memref<1x128xf32, #tpu.memory_space<vmem>>, %arg5: memref<8x128xf32, #tpu.memory_space<vmem>>) attributes {dimension_semantics = [#tpu.dimension_semantics<parallel>], iteration_bounds = array<i64: 1>, scalar_prefetch = 0 : i64, scratch_operands = 0 : i64, tpu.core_type = #tpu.core_type<tc>, window_params = [{transform_indices = @transform_0, window_bounds = array<i64: 1>}, {transform_indices = @transform_1, window_bounds = array<i64: 8, 512>}, {pipeline_mode = #tpu.pipeline_mode<synchronous>, transform_indices = @transform_2, window_bounds = array<i64: 128, 512>}, {pipeline_mode = #tpu.pipeline_mode<synchronous>, transform_indices = @transform_3, window_bounds = array<i64: 1, 128>}, {transform_indices = @transform_4, window_bounds = array<i64: 8, 128>}]} {
    %c0 = arith.constant 0 : index
    %c0_0 = arith.constant 0 : index
    %0 = vector.load %arg2[%c0, %c0_0] : memref<8x512xf32, #tpu.memory_space<vmem>>, vector<8x512xf32>
    %1 = arith.mulf %0, %0 : vector<8x512xf32>
    %cst = arith.constant dense<0.000000e+00> : vector<8xf32>
    %2 = vector.multi_reduction <add>, %1, %cst [1] : vector<8x512xf32> to vector<8xf32>
    %3 = vector.shape_cast %2 : vector<8xf32> to vector<8x1xf32>
    %cst_1 = arith.constant 1.000000e-24 : f32
    %4 = vector.broadcast %cst_1 : f32 to vector<8x1xf32>
    %5 = arith.maximumf %3, %4 : vector<8x1xf32>
    %6 = math.rsqrt %5 : vector<8x1xf32>
    %c0_2 = arith.constant 0 : index
    %c0_3 = arith.constant 0 : index
    %7 = vector.load %arg3[%c0_2, %c0_3] : memref<128x512xf32, #tpu.memory_space<vmem>>, vector<128x512xf32>
    %cst_4 = arith.constant dense<0.000000e+00> : vector<8x128xf32>
    %8 = tpu.matmul %0, %7, %cst_4 {dimension_numbers = #tpu.dot_dimension_numbers<[1], [1], [0], [0], [0, 0, 1, 0], [], []>} : vector<8x512xf32>, vector<128x512xf32>, vector<8x128xf32> -> vector<8x128xf32>
    %c0_5 = arith.constant 0 : index
    %9 = memref.load %arg1[%c0_5] : memref<1xf32, #tpu.memory_space<smem>>
    %10 = vector.broadcast %9 : f32 to vector<8x1xf32>
    %11 = arith.mulf %6, %10 : vector<8x1xf32>
    %12 = vector.broadcast %11 : vector<8x1xf32> to vector<8x128xf32>
    %13 = arith.mulf %8, %12 : vector<8x128xf32>
    %c0_6 = arith.constant 0 : index
    %c0_7 = arith.constant 0 : index
    %14 = vector.load %arg4[%c0_6, %c0_7] : memref<1x128xf32, #tpu.memory_space<vmem>>, vector<1x128xf32>
    %15 = vector.broadcast %14 : vector<1x128xf32> to vector<8x128xf32>
    %16 = arith.mulf %13, %15 : vector<8x128xf32>
    %c0_8 = arith.constant 0 : index
    %c0_9 = arith.constant 0 : index
    %17 = vector.load %arg5[%c0_8, %c0_9] : memref<8x128xf32, #tpu.memory_space<vmem>>, vector<8x128xf32>
    tpu.vector_store %arg5[%c0_8, %c0_9], %16 {strides = array<i32>} : memref<8x128xf32, #tpu.memory_space<vmem>>, vector<8x128xf32>,
    return
  }
  func.func @transform_0(%arg0: i32) -> i32 {
    %c0_i32 = arith.constant 0 : i32
    %c0_i32_0 = arith.constant 0 : i32
    return %c0_i32 : i32
  }
  func.func @transform_1(%arg0: i32) -> (i32, i32) {
    %c0_i32 = arith.constant 0 : i32
    %c0_i32_0 = arith.constant 0 : i32
    return %arg0, %c0_i32 : i32, i32
  }
  func.func @transform_2(%arg0: i32) -> (i32, i32) {
    %c0_i32 = arith.constant 0 : i32
    %c0_i32_0 = arith.constant 0 : i32
    %c0_i32_1 = arith.constant 0 : i32
    return %c0_i32, %c0_i32_0 : i32, i32
  }
  func.func @transform_3(%arg0: i32) -> (i32, i32) {
    %c0_i32 = arith.constant 0 : i32
    %c0_i32_0 = arith.constant 0 : i32
    %c0_i32_1 = arith.constant 0 : i32
    return %c0_i32, %c0_i32_0 : i32, i32
  }
  func.func @transform_4(%arg0: i32) -> (i32, i32) {
    %c0_i32 = arith.constant 0 : i32
    %c0_i32_0 = arith.constant 0 : i32
    return %arg0, %c0_i32 : i32, i32
  }
}

</mosaic_0001>

<bundles_post_ra>
// kernel: tpu_custom_call.1
= control target key start
LH: loop header
LB: loop body
LE: loop exit
PB: predicated region body
PF: predicated region fallthrough
CT: control target
= control target key end

     0   :  { %10 = vsyncpa [#allocation4], 0  ;;  %s527_s0 = inlined_call_operand.<no memory space> [shape: f32[1], index: 0, kind: input, shape index: {}]   ;;  %s528_s1 = inlined_call_operand.hbm [shape: f32[8,512], index: 1, kind: input, shape index: {}]   ;;  %s529_s2 = inlined_call_operand.hbm [shape: f32[128,512], index: 2, kind: input, shape index: {}]   ;;  %s530_s3 = inlined_call_operand.vmem [shape: f32[1,128], index: 3, kind: input, shape index: {}]   ;;  %s531_s4 = inlined_call_operand.hbm [shape: f32[8,128], index: 4, kind: output, shape index: {}]  }
   0x1   :  { %11 = vsyncpa [#allocation7], 0 }
   0x2   :  { %12 = vsyncpa [#allocation5], 0  ;;  %s438_s15 = smov [#allocation3]   ;;  %s439_s17 = smov [#allocation6]  }
   0x3   :  { %s21_s16 = sshll.u32 %s438_s15, 4  ;;  %s30_s18 = sshll.u32 %s439_s17, 4  ;;  %s22_s16 = int_to_ptr.vmem [resolvable:$true] %s21_s16  ;;  %s468_s18 = int_to_ptr.vmem [resolvable:$true] %s30_s18 }
   0x4   :  { %s366_s21 = scalar_lea.hbm %s528_s1, 512 }
   0x5   :  { %p367_p0 = scmp.ne.s32.totalorder %s528_s1, %s366_s21  ;;  %p370_p1 = scmp.lt.u32.totalorder %s366_s21, %s528_s1 }
   0x7   :  { %p372_p2 = pnand %p370_p1, %p367_p0 }
   0x9   :  { %375 = shalt.err (!%p372_p2)
}
   0xa   :  { %s376_s26 = scalar_lea.vmem %s22_s16, 512  ;;  %p381_p4 = scmp.lt.s32.totalorder %s22_s16, %s22_s16 }
   0xb   :  { %p377_p3 = scmp.ne.s32.totalorder %s22_s16, %s376_s26  ;;  %p382_p5 = scmp.lt.s32.totalorder %s376_s26, %s376_s26 }
   0xd   :  { %p383_p6 = por %p382_p5, %p381_p4 }
   0xf   :  { %p384_p7 = pnand %p383_p6, %p377_p3 }
  0x11   :  { %387 = shalt.err (!%p384_p7)
}
  0x12   :  { %24 = dma.hbm_to_vmem [thread:$0]  %s528_s1, 512, %s22_s16, [#allocation4]  }
  0x13   :  { %s388_s5 = scalar_lea.hbm %s529_s2, 8192 }
  0x14   :  { %p389_p8 = scmp.ne.s32.totalorder %s529_s2, %s388_s5  ;;  %p392_p9 = scmp.lt.u32.totalorder %s388_s5, %s529_s2 }
  0x16   :  { %p394_p10 = pnand %p392_p9, %p389_p8 }
  0x18   :  { %397 = shalt.err (!%p394_p10)
}
  0x19   :  { %s398_s10 = scalar_lea.vmem %s468_s18, 8192  ;;  %p403_p12 = scmp.lt.s32.totalorder %s468_s18, %s468_s18 }
  0x1a   :  { %p399_p11 = scmp.ne.s32.totalorder %s468_s18, %s398_s10  ;;  %p404_p13 = scmp.lt.s32.totalorder %s398_s10, %s398_s10 }
  0x1c   :  { %p405_p0 = por %p404_p13, %p403_p12 }
  0x1e   :  { %p406_p1 = pnand %p405_p0, %p399_p11 }
  0x20   :  { %409 = shalt.err (!%p406_p1)
}
  0x21   :  { %s440_s1 = smov 512   ;;  %s441_s11 = smov 32  }
  0x22   :  { %36 = dma.hbm_to_vmem [thread:$0]  %s529_s2, 8192, %s468_s18, [#allocation7], %s440_s1, %s440_s1, %s441_s11  }
  0x23   :  { %432 = dma.done.wait [#allocation4], 512  }
  0x24   :  { %433 = vsyncadd [#allocation4], 4294966784 }
  0x25   :  { %434 = dma.done.wait [#allocation7], 8192  }
  0x26   :  { %435 = vsyncadd [#allocation7], 4294959104  ;;  %v61_v0 = vld [vmem:[#allocation6 + $0x8] sm:$0xff]  ;;  %v63_v2 = vld [vmem:[#allocation6 + $0x18] sm:$0xff]  ;;  %s442_s17 = smov [#allocation8]  }
  0x27   :  { %v65_v1 = vld [vmem:[#allocation6 + $0x28] sm:$0xff]  ;;  %v67_v4 = vld [vmem:[#allocation6 + $0x38] sm:$0xff]  ;;  %v60_v5 = vld [vmem:[#allocation6] sm:$0xff]  ;;  %s283_s18 = sshll.u32 %s442_s17, 4  ;;  %s284_s18 = int_to_ptr.vmem [resolvable:$true] %s283_s18 }
  0x28   :  { %v294_v3 = vpack.c.bf16 %v65_v1, %v61_v0  ;;  %v64_v6 = vld [vmem:[#allocation6 + $0x20] sm:$0xff]  ;;  %v326_v7 = vpack.c.bf16 %v67_v4, %v63_v2  ;;  %v62_v9 = vld [vmem:[#allocation6 + $0x10] sm:$0xff]  ;;  %v69_v11 = vld [vmem:[#allocation6 + $0x48] sm:$0xff]  ;;  %s410_s19 = scalar_lea.vmem %s284_s18, 128  ;;  %p415_p3 = scmp.lt.s32.totalorder %s284_s18, %s284_s18 }
  0x29   :  { %v296_v8 = vpack.c.bf16 %v64_v6, %v60_v5  ;;  %v66_v10 = vld [vmem:[#allocation6 + $0x30] sm:$0xff]  ;;  %v73_v13 = vld [vmem:[#allocation6 + $0x68] sm:$0xff]  ;;  %v71_v14 = vld [vmem:[#allocation6 + $0x58] sm:$0xff]  ;;  %p411_p2 = scmp.ne.s32.totalorder %s284_s18, %s410_s19  ;;  %p416_p4 = scmp.lt.s32.totalorder %s410_s19, %s410_s19 }
  0x2a   :  { %295 = vmatprep.subr.bf16.mxu1 %v294_v3  ;;  %v328_v12 = vpack.c.bf16 %v66_v10, %v62_v9  ;;  %v75_v15 = vld [vmem:[#allocation6 + $0x78] sm:$0xff]  ;;  %327 = vmatprep.subr.bf16.mxu0 %v326_v7  ;;  %v298_v16 = vpack.c.bf16 %v73_v13, %v69_v11  ;;  %v68_v18 = vld [vmem:[#allocation6 + $0x40] sm:$0xff]  ;;  %v70_v20 = vld [vmem:[#allocation6 + $0x50] sm:$0xff] }
  0x2b   :  { %297 = vmatpush1.bf16.xpose.msra.mxu1 %v296_v8  ;;  %v330_v17 = vpack.c.bf16 %v75_v15, %v71_v14  ;;  %v72_v19 = vld [vmem:[#allocation6 + $0x60] sm:$0xff]  ;;  %v74_v21 = vld [vmem:[#allocation6 + $0x70] sm:$0xff]  ;;  %v77_v22 = vld [vmem:[#allocation6 + $0x88] sm:$0xff]  ;;  %p417_p5 = por %p416_p4, %p415_p3 }
  0x2c   :  { %329 = vmatpush1.bf16.xpose.msra.mxu0 %v328_v12  ;;  %299 = vmatprep.subr.bf16.mxu1 %v298_v16  ;;  %v81_v23 = vld [vmem:[#allocation6 + $0xa8] sm:$0xff]  ;;  %v79_v24 = vld [vmem:[#allocation6 + $0x98] sm:$0xff]  ;;  %v300_v26 = vpack.c.bf16 %v72_v19, %v68_v18  ;;  %v332_v27 = vpack.c.bf16 %v74_v21, %v70_v20  ;;  %v76_v30 = vld [vmem:[#allocation6 + $0x80] sm:$0xff] }
  0x2d   :  { %331 = vmatprep.subr.bf16.mxu0 %v330_v17  ;;  %v83_v25 = vld [vmem:[#allocation6 + $0xb8] sm:$0xff]  ;;  %v302_v28 = vpack.c.bf16 %v81_v23, %v77_v22  ;;  %v80_v31 = vld [vmem:[#allocation6 + $0xa0] sm:$0xff]  ;;  %v78_v32 = vld [vmem:[#allocation6 + $0x90] sm:$0xff]  ;;  %p418_p6 = pnand %p417_p5, %p411_p2 }
  0x2e   :  { %v334_v29 = vpack.c.bf16 %v83_v25, %v79_v24  ;;  %v82_v33 = vld [vmem:[#allocation6 + $0xb0] sm:$0xff]  ;;  %v85_v34 = vld [vmem:[#allocation6 + $0xc8] sm:$0xff]  ;;  %v87_v36 = vld [vmem:[#allocation6 + $0xd8] sm:$0xff]  ;;  %v304_v38 = vpack.c.bf16 %v80_v31, %v76_v30 }
  0x2f   :  { %v89_v35 = vld [vmem:[#allocation6 + $0xe8] sm:$0xff]  ;;  %v91_v37 = vld [vmem:[#allocation6 + $0xf8] sm:$0xff]  ;;  %v336_v39 = vpack.c.bf16 %v82_v33, %v78_v32  ;;  %v84_v42 = vld [vmem:[#allocation6 + $0xc0] sm:$0xff] }
  0x30   :  { %v306_v40 = vpack.c.bf16 %v89_v35, %v85_v34  ;;  %v338_v41 = vpack.c.bf16 %v91_v37, %v87_v36  ;;  %v88_v43 = vld [vmem:[#allocation6 + $0xe0] sm:$0xff]  ;;  %v86_v44 = vld [vmem:[#allocation6 + $0xd0] sm:$0xff]  ;;  %v93_v46 = vld [vmem:[#allocation6 + $0x108] sm:$0xff] }
  0x31   :  { %v90_v45 = vld [vmem:[#allocation6 + $0xf0] sm:$0xff]  ;;  %v46_v47 = vld [vmem:[#allocation3 + $0x8] sm:$0xff]  ;;  %v48_v48 = vld [vmem:[#allocation3 + $0x18] sm:$0xff]  ;;  %v308_v57 = vpack.c.bf16 %v88_v43, %v84_v42 }
  0x32   :  { %v97_v49 = vld [vmem:[#allocation6 + $0x128] sm:$0xff]  ;;  %v50_v50 = vmul.f32 %v46_v47, %v46_v47  ;;  %188 = vmatprep.mubr.f32.mxu1 %v46_v47  ;;  %v499_v51 = vld [vmem:[#allocation3] sm:$0xff]  ;;  %v501_v52 = vld [vmem:[#allocation3 + $0x10] sm:$0xff]  ;;  %258 = vmatprep.mubr.f32.mxu0 %v48_v48  ;;  %v340_v58 = vpack.c.bf16 %v90_v45, %v86_v44  ;;  %v52_v60 = vmul.f32 %v48_v48, %v48_v48 }
  0x33   :  { %301 = vmatpush1.bf16.xpose.msra.mxu1 %v300_v26  ;;  %v95_v53 = vld [vmem:[#allocation6 + $0x118] sm:$0xff]  ;;  %v49_v55 = vmul.f32 %v499_v51, %v499_v51  ;;  %v51_v56 = vmul.f32 %v501_v52, %v501_v52  ;;  %v310_v59 = vpack.c.bf16 %v97_v49, %v93_v46  ;;  %v92_v0 = vld [vmem:[#allocation6 + $0x100] sm:$0xff]  ;;  %v94_v2 = vld [vmem:[#allocation6 + $0x110] sm:$0xff]  ;;  %v265_v46 = vstv %s527_s0 }
  0x34   :  { %333 = vmatpush1.bf16.xpose.msra.mxu0 %v332_v27  ;;  %303 = vmatprep.subr.bf16.mxu1 %v302_v28  ;;  %v99_v54 = vld [vmem:[#allocation6 + $0x138] sm:$0xff]  ;;  %v96_v1 = vld [vmem:[#allocation6 + $0x120] sm:$0xff]  ;;  %v98_v4 = vld [vmem:[#allocation6 + $0x130] sm:$0xff] }
  0x35   :  { %335 = vmatprep.subr.bf16.mxu0 %v334_v29  ;;  %v53_v61 = vadd.f32 %v50_v50, %v49_v55  ;;  %v342_v62 = vpack.c.bf16 %v99_v54, %v95_v53  ;;  %v101_v5 = vld [vmem:[#allocation6 + $0x148] sm:$0xff]  ;;  %v103_v7 = vld [vmem:[#allocation6 + $0x158] sm:$0xff]  ;;  %v312_v9 = vpack.c.bf16 %v96_v1, %v92_v0  ;;  %v344_v10 = vpack.c.bf16 %v98_v4, %v94_v2  ;;  %v100_v13 = vld [vmem:[#allocation6 + $0x140] sm:$0xff] }
  0x36   :  { %v105_v6 = vld [vmem:[#allocation6 + $0x168] sm:$0xff]  ;;  %v107_v8 = vld [vmem:[#allocation6 + $0x178] sm:$0xff]  ;;  %v104_v14 = vld [vmem:[#allocation6 + $0x160] sm:$0xff] }
  0x37   :  { %v54_v63 = vadd.f32 %v53_v61, %v51_v56  ;;  %v314_v11 = vpack.c.bf16 %v105_v6, %v101_v5  ;;  %v346_v12 = vpack.c.bf16 %v107_v8, %v103_v7  ;;  %v102_v15 = vld [vmem:[#allocation6 + $0x150] sm:$0xff]  ;;  %v109_v17 = vld [vmem:[#allocation6 + $0x188] sm:$0xff]  ;;  %v111_v19 = vld [vmem:[#allocation6 + $0x198] sm:$0xff]  ;;  %v316_v21 = vpack.c.bf16 %v104_v14, %v100_v13 }
  0x38   :  { %v106_v16 = vld [vmem:[#allocation6 + $0x170] sm:$0xff]  ;;  %v113_v18 = vld [vmem:[#allocation6 + $0x1a8] sm:$0xff]  ;;  %v115_v20 = vld [vmem:[#allocation6 + $0x1b8] sm:$0xff] }
  0x39   :  { %v55_v3 = vadd.f32 %v54_v63, %v52_v60  ;;  %v348_v22 = vpack.c.bf16 %v106_v16, %v102_v15  ;;  %v318_v23 = vpack.c.bf16 %v113_v18, %v109_v17  ;;  %v350_v24 = vpack.c.bf16 %v115_v20, %v111_v19  ;;  %v108_v25 = vld [vmem:[#allocation6 + $0x180] sm:$0xff]  ;;  %v110_v27 = vld [vmem:[#allocation6 + $0x190] sm:$0xff]  ;;  %v117_v29 = vld [vmem:[#allocation6 + $0x1c8] sm:$0xff] }
  0x3a   :  { %v112_v26 = vld [vmem:[#allocation6 + $0x1a0] sm:$0xff]  ;;  %v114_v28 = vld [vmem:[#allocation6 + $0x1b0] sm:$0xff]  ;;  %v121_v30 = vld [vmem:[#allocation6 + $0x1e8] sm:$0xff] }
  0x3b   :  { %305 = vmatpush1.bf16.xpose.msra.mxu1 %v304_v38  ;;  %56 = vadd.xlane.f32.xlu0 %v55_v3  ;;  %v119_v31 = vld [vmem:[#allocation6 + $0x1d8] sm:$0xff]  ;;  %v320_v33 = vpack.c.bf16 %v112_v26, %v108_v25  ;;  %v352_v34 = vpack.c.bf16 %v114_v28, %v110_v27  ;;  %v322_v35 = vpack.c.bf16 %v121_v30, %v117_v29  ;;  %v116_v37 = vld [vmem:[#allocation6 + $0x1c0] sm:$0xff] }
  0x3c   :  { %337 = vmatpush1.bf16.xpose.msra.mxu0 %v336_v39  ;;  %307 = vmatprep.subr.bf16.mxu1 %v306_v40  ;;  %v123_v32 = vld [vmem:[#allocation6 + $0x1f8] sm:$0xff]  ;;  %v120_v38 = vld [vmem:[#allocation6 + $0x1e0] sm:$0xff]  ;;  %v118_v39 = vld [vmem:[#allocation6 + $0x1d0] sm:$0xff] }
  0x3d   :  { %339 = vmatprep.subr.bf16.mxu0 %v338_v41  ;;  %v354_v36 = vpack.c.bf16 %v123_v32, %v119_v31  ;;  %v122_v40 = vld [vmem:[#allocation6 + $0x1f0] sm:$0xff]  ;;  %v324_v41 = vpack.c.bf16 %v120_v38, %v116_v37 }
  0x3e   :  { %v356_v42 = vpack.c.bf16 %v122_v40, %v118_v39 }
  0x43   :  { %309 = vmatpush1.bf16.xpose.msra.mxu1 %v308_v57 }
  0x44   :  { %341 = vmatpush1.bf16.xpose.msra.mxu0 %v340_v58  ;;  %311 = vmatprep.subr.bf16.mxu1 %v310_v59 }
  0x45   :  { %343 = vmatprep.subr.bf16.mxu0 %v342_v62 }
  0x4b   :  { %313 = vmatpush1.bf16.xpose.msra.mxu1 %v312_v9 }
  0x4c   :  { %345 = vmatpush1.bf16.xpose.msra.mxu0 %v344_v10  ;;  %315 = vmatprep.subr.bf16.mxu1 %v314_v11 }
  0x4d   :  { %347 = vmatprep.subr.bf16.mxu0 %v346_v12 }
  0x53   :  { %317 = vmatpush1.bf16.xpose.msra.mxu1 %v316_v21 }
  0x54   :  { %349 = vmatpush1.bf16.xpose.msra.mxu0 %v348_v22  ;;  %319 = vmatprep.subr.bf16.mxu1 %v318_v23 }
  0x55   :  { %351 = vmatprep.subr.bf16.mxu0 %v350_v24 }
  0x5b   :  { %321 = vmatpush1.bf16.xpose.msra.mxu1 %v320_v33 }
  0x5c   :  { %353 = vmatpush1.bf16.xpose.msra.mxu0 %v352_v34  ;;  %323 = vmatprep.subr.bf16.mxu1 %v322_v35 }
  0x5d   :  { %355 = vmatprep.subr.bf16.mxu0 %v354_v36 }
  0x63   :  { %325 = vmatpush1.bf16.xpose.msra.mxu1 %v324_v41 }
  0x64   :  { %357 = vmatpush1.bf16.xpose.msra.mxu0 %v356_v42 }
  0x6a   :  { %189 = vmatmul.mubr.f32.vlgmr.msra.gmra.mrb[0].mxu1 %v499_v51  ;;  %v293_v51 = vld [vmem:[%s530_s3] ss:$0 sm:$0xff] }
  0x6b   :  { %259 = vmatmul.mubr.f32.vlgmr.msra.gmra.mrb[0].mxu0 %v501_v52 }
  0xc8   :  { %v57_v43 = vpop.xlane.xlu0 %56 }
  0xc9   :  { %v58_v44 = vmax.f32 %v57_v43, 1e-24 }
  0xcb   :  { %364 = vrsqrt.f32 %v58_v44 }
  0xd5   :  { %v365_v45 = vpop.eup %364 }
  0xd6   :  { %v266_v48 = vmul.f32 %v365_v45, %v265_v46 }
 0x13d   :  { %v190_v47 = vpop.f32.mrb[0].mxu1 }
 0x13e   :  { %v260_v49 = vpop.f32.mrb[0].mxu0  ;;  %v192_v50 = vpop.f32.mrb[1].mxu1 }
 0x13f   :  { %v261_v53 = vadd.f32 %v260_v49, %v190_v47  ;;  %v262_v54 = vpop.f32.mrb[1].mxu0 }
 0x141   :  { %v267_v52 = vmul.f32 %v266_v48, %v261_v53 }
 0x143   :  { %v275_v55 = vmul.f32 %v293_v51, %v267_v52 }
 0x145   :  { %276 = vst [vmem:[#allocation8] sm:$0xff] %v275_v55 }
 0x146   :  { %421 = shalt.err (!%p418_p6)
}
 0x147   :  { %s422_s21 = scalar_lea.hbm %s531_s4, 128 }
 0x148   :  { %p423_p7 = scmp.ne.s32.totalorder %s531_s4, %s422_s21  ;;  %p426_p8 = scmp.lt.u32.totalorder %s422_s21, %s531_s4 }
 0x14a   :  { %p428_p9 = pnand %p426_p8, %p423_p7 }
 0x14c   :  { %431 = shalt.err (!%p428_p9)
}
 0x14d   :  { %286 = dma.vmem_to_hbm [thread:$0]  %s284_s18, 128, %s531_s4, [#allocation5]  }
 0x14e   :  { %436 = dma.done.wait [#allocation5], 128  }
 0x14f   :  { %437 = vsyncadd [#allocation5], 4294967168 }
 0x150   :  { %290 = vsyncpa [#allocation4], 1 }
 0x151   :  { %291 = vsyncpa [#allocation7], 1 }
 0x152   :  { %292 = vsyncpa [#allocation5], 1 }

</bundles_post_ra>
